<compile_context>
chip_gen: v6e
topology: v6e:2x2x1
jax: 0.10.0
libtpu: 0.0.40
codegen_flags: <defaults>
</compile_context>

<pallas_src>
import math
from functools import partial

import jax
import jax.numpy as jnp
from jax import lax
from jax.experimental import pallas as pl
from jax.experimental.pallas import tpu as pltpu

_NEG_INF = -1e30  # large negative finite value: exp() underflows to 0, no inf/NaN arithmetic


def _round_up(x, m):
    return (x + m - 1) // m * m


def _vmem_limit_bytes():
    """~3/4 of physical VMEM (96 MiB on v5e/v6e, 48 MiB on v7x); conservative fallback."""
    try:
        cap = int(pltpu.get_tpu_info().vmem_capacity_bytes)
    except Exception:
        cap = 64 * 1024 * 1024
    return cap * 3 // 4


# ---------------------------------------------------------------------------
# Kernel 1: fused QKV projection, emitting head-major Q/K/V directly
# ---------------------------------------------------------------------------
def _qkv_proj_kernel(x_ref, wqkv_ref, q_ref, k_ref, v_ref, *, n_heads, head_dim, d_model):
    # x_ref: (1, TB, D), wqkv_ref: (D, 3D)
    # q_ref/k_ref/v_ref: (1, H, TB, hd)   (head-major -> no XLA transpose afterwards)
    qkv = jnp.dot(x_ref[0], wqkv_ref[...], preferred_element_type=jnp.float32)  # (TB, 3D) f32
    for h in range(n_heads):
        lo = h * head_dim
        q_ref[0, h] = qkv[:, lo:lo + head_dim].astype(q_ref.dtype)
        k_ref[0, h] = qkv[:, d_model + lo:d_model + lo + head_dim].astype(k_ref.dtype)
        v_ref[0, h] = qkv[:, 2 * d_model + lo:2 * d_model + lo + head_dim].astype(v_ref.dtype)


# ---------------------------------------------------------------------------
# Kernel 2: flash attention (online softmax) + fused output projection
# ---------------------------------------------------------------------------
def _flash_mha_kernel(q_ref, k_ref, v_ref, wo_ref, bo_ref, o_ref,
                      m_sc, l_sc, acc_sc, *, block_q, block_kv, n_heads):
    # q_ref: (1, H, TQ, hd)   k_ref/v_ref: (1, H, TKV, hd)
    # wo_ref: (D, d_out)  bo_ref: (1, d_out)   o_ref: (1, TQ, d_out)
    # scratch: m_sc/l_sc (H, TQ, 1) f32, acc_sc (H, TQ, hd) f32
    ki = pl.program_id(2)
    q_start = pl.program_id(1) * block_q
    kv_start = ki * block_kv

    @pl.when(ki == 0)
    def _init():
        m_sc[...] = jnp.full(m_sc.shape, _NEG_INF, m_sc.dtype)
        l_sc[...] = jnp.zeros(l_sc.shape, l_sc.dtype)
        acc_sc[...] = jnp.zeros(acc_sc.shape, acc_sc.dtype)

    def _attend(apply_mask):
        q = q_ref[0]  # (H, TQ, hd)   scale already folded into the Q weight
        k = k_ref[0]  # (H, TKV, hd)
        v = v_ref[0]  # (H, TKV, hd)
        s = jnp.einsum("hqd,hkd->hqk", q, k,
                       preferred_element_type=jnp.float32)            # (H, TQ, TKV) f32
        if apply_mask:  # only diagonal tiles pay for the iota/compare/select pass
            rows = q_start + lax.broadcasted_iota(jnp.int32, (block_q, block_kv), 0)
            cols = kv_start + lax.broadcasted_iota(jnp.int32, (block_q, block_kv), 1)
            s = jnp.where((cols <= rows)[None, :, :], s, _NEG_INF)

        m_prev = m_sc[...]                                             # (H, TQ, 1)
        m_new = jnp.maximum(m_prev, jnp.max(s, axis=-1, keepdims=True))
        alpha = jnp.exp(m_prev - m_new)
        p = jnp.exp(s - m_new)                                         # (H, TQ, TKV) f32
        l_sc[...] = alpha * l_sc[...] + jnp.sum(p, axis=-1, keepdims=True)
        acc_sc[...] = alpha * acc_sc[...] + jnp.einsum(
            "hqk,hkd->hqd", p.astype(v.dtype), v,
            preferred_element_type=jnp.float32)                        # (H, TQ, hd)
        m_sc[...] = m_new

    # Three tile classes w.r.t. the causal mask.  Fully-masked tiles: neither branch runs
    # (and their DMA is elided by the clamped index_map in the wrapper).
    is_diag = jnp.logical_and(kv_start < q_start + block_q,
                              kv_start + block_kv - 1 > q_start)
    is_full = kv_start + block_kv - 1 <= q_start

    @pl.when(is_diag)
    def _diag():
        _attend(True)

    @pl.when(is_full)
    def _full():
        _attend(False)

    @pl.when(ki == pl.num_programs(2) - 1)
    def _finalize():
        inv_l = pl.reciprocal(l_sc[...], approx=True)      # EUP slot, off the VALU critical path
        attn = acc_sc[...] * inv_l                          # (H, TQ, hd) f32
        # Merge heads along lanes -> one wide (TQ, D) @ (D, d_out) MXU matmul (K = D, not hd).
        merged = jnp.concatenate([attn[h] for h in range(n_heads)], axis=-1)   # (TQ, D)
        out = jnp.dot(merged.astype(wo_ref.dtype), wo_ref[...],
                      preferred_element_type=jnp.float32)
        out = out + bo_ref[...].astype(jnp.float32)          # (1, d_out) broadcasts over TQ
        o_ref[0] = out.astype(o_ref.dtype)


# ---------------------------------------------------------------------------
# Wrapper
# ---------------------------------------------------------------------------
def multi_head_attention(x, wq_t, wk_t, wv_t, wo_t, bo, *, n_heads):
    """x: (B, T, D). wq_t/wk_t/wv_t: (D, D) transposed linear weights (x @ W convention).
    wo_t: (D, d_out) transposed output weight. bo: (1, d_out)."""
    B, T, D = x.shape
    d_out = wo_t.shape[1]
    head_dim = D // n_heads
    scale = 1.0 / math.sqrt(head_dim)

    # Sequence tiling: pad T to an (8,128)-friendly tile multiple.  Causality guarantees padded
    # kv columns never contribute to real rows; padded query rows are sliced off at the end.
    if T > 256:
        block_q = block_kv = 256          # K/V re-stream intensity above the HBM ridge
        T_pad = _round_up(T, 256)
        block_t = 512 if T_pad % 512 == 0 else 256
    else:
        T_pad = _round_up(T, 8)
        block_q = block_kv = block_t = T_pad

    if T_pad != T:
        x = jnp.pad(x, ((0, 0), (0, T_pad - T), (0, 0)))

    vmem_limit = _vmem_limit_bytes()
    params_proj = pltpu.CompilerParams(
        dimension_semantics=("parallel", "parallel"),
        vmem_limit_bytes=vmem_limit)
    params_attn = pltpu.CompilerParams(
        dimension_semantics=("parallel", "parallel", "arbitrary"),
        vmem_limit_bytes=vmem_limit)

    # ---- 1) fused QKV projection (scale folded into the Q weight) -----------------
    wqkv = jnp.concatenate([wq_t * scale, wk_t, wv_t], axis=1)          # (D, 3D)
    # TODO(synk): tile the (D, 3D) weight over N (and K) for very large D instead of keeping it resident.

    proj = partial(_qkv_proj_kernel, n_heads=n_heads, head_dim=head_dim, d_model=D)
    qkv_shape = jax.ShapeDtypeStruct((B, n_heads, T_pad, head_dim), x.dtype)
    head_out_spec = pl.BlockSpec((1, n_heads, block_t, head_dim), lambda b, i: (b, 0, i, 0))
    q, k, v = pl.pallas_call(
        proj,
        out_shape=(qkv_shape, qkv_shape, qkv_shape),
        grid=(B, T_pad // block_t),
        in_specs=[
            pl.BlockSpec((1, block_t, D), lambda b, i: (b, i, 0)),
            pl.BlockSpec((D, 3 * D), lambda b, i: (0, 0)),
        ],
        out_specs=[head_out_spec, head_out_spec, head_out_spec],
        compiler_params=params_proj,
    )(x, wqkv)

    # ---- 2) flash attention + fused output projection ------------------------------
    # K/V index_map clamped to the last causally-needed kv tile: fully-masked (future) tiles
    # re-use the resident block, so no DMA is issued for the steps the kernel skips.
    def kv_index_map(b, qi, ki):
        last_needed = (qi * block_q + block_q - 1) // block_kv
        return (b, 0, jnp.minimum(ki, last_needed), 0)

    kernel = partial(_flash_mha_kernel, block_q=block_q, block_kv=block_kv, n_heads=n_heads)

    out = pl.pallas_call(
        kernel,
        out_shape=jax.ShapeDtypeStruct((B, T_pad, d_out), x.dtype),
        grid=(B, T_pad // block_q, T_pad // block_kv),
        in_specs=[
            pl.BlockSpec((1, n_heads, block_q, head_dim),
                         lambda b, qi, ki: (b, 0, qi, 0)),
            pl.BlockSpec((1, n_heads, block_kv, head_dim), kv_index_map),
            pl.BlockSpec((1, n_heads, block_kv, head_dim), kv_index_map),
            pl.BlockSpec((D, d_out), lambda b, qi, ki: (0, 0)),
            pl.BlockSpec((1, d_out), lambda b, qi, ki: (0, 0)),
        ],
        out_specs=pl.BlockSpec((1, block_q, d_out), lambda b, qi, ki: (b, qi, 0)),
        scratch_shapes=[
            pltpu.VMEM((n_heads, block_q, 1), jnp.float32),         # m (running max)
            pltpu.VMEM((n_heads, block_q, 1), jnp.float32),         # l (running denom)
            pltpu.VMEM((n_heads, block_q, head_dim), jnp.float32),  # acc
        ],
        compiler_params=params_attn,
    )(q, k, v, wo_t, bo)

    if T_pad != T:
        out = out[:, :T, :]
    return out


# ---------------------------------------------------------------------------
# Pure-JAX reference mirroring the (intended) PyTorch forward
# ---------------------------------------------------------------------------
def reference_mha(x, wq_t, wk_t, wv_t, wo_t, bo, *, n_heads):
    B, T, D = x.shape
    hd = D // n_heads
    q = x @ wq_t
    k = x @ wk_t
    v = x @ wv_t

    def split(a):
        return a.reshape(B, T, n_heads, hd).transpose(0, 2, 1, 3)     # (B, H, T, hd)

    q, k, v = split(q), split(k), split(v)
    s = jnp.einsum("bhqd,bhkd->bhqk", q, k) / math.sqrt(hd)
    mask = jnp.triu(jnp.ones((T, T), dtype=bool), k=1)
    s = jnp.where(mask, -jnp.inf, s)
    p = jax.nn.softmax(s, axis=-1)
    o = jnp.einsum("bhqk,bhkd->bhqd", p, v)
    o = o.transpose(0, 2, 1, 3).reshape(B, T, D)
    return o @ wo_t + bo


if __name__ == "__main__":
    # Module hyperparameters (small, consistent with the PyTorch module)
    d_in = 32
    d_out = 32
    context_length = 8
    n_heads = 4
    B = 2

    key = jax.random.PRNGKey(0)
    kx, kq, kk, kv_, ko, kb = jax.random.split(key, 6)

    # PyTorch Linear stores weight as (out, in); generate that then transpose
    # for the kernel's x @ W convention.
    scale_in = 1.0 / math.sqrt(d_in)
    wq = jax.random.uniform(kq, (d_in, d_in), jnp.float32, -scale_in, scale_in)
    wk = jax.random.uniform(kk, (d_in, d_in), jnp.float32, -scale_in, scale_in)
    wv = jax.random.uniform(kv_, (d_in, d_in), jnp.float32, -scale_in, scale_in)
    wo = jax.random.uniform(ko, (d_out, d_in), jnp.float32, -scale_in, scale_in)
    bo = jax.random.uniform(kb, (1, d_out), jnp.float32, -scale_in, scale_in)

    x = jax.random.normal(kx, (B, context_length, d_in), jnp.float32)

    wq_t, wk_t, wv_t, wo_t = wq.T, wk.T, wv.T, wo.T

    out = multi_head_attention(x, wq_t, wk_t, wv_t, wo_t, bo, n_heads=n_heads)
    out = jax.block_until_ready(out)

    ref = reference_mha(x, wq_t, wk_t, wv_t, wo_t, bo, n_heads=n_heads)
    assert out.shape == (B, context_length, d_out)
    # tolerance accounts for the approx-reciprocal softmax normalization (EUP path)
    assert jnp.allclose(out, ref, atol=2e-3, rtol=2e-3), "Pallas output mismatch vs reference"

    print("KERNEL_OK")
</pallas_src>

<mosaic_0001>
module attributes {stable_mosaic.version = 11 : i64} {
  func.func @_qkv_proj_kernel(%arg0: i32, %arg1: i32, %arg2: memref<1x8x32xf32, #tpu.memory_space<vmem>>, %arg3: memref<32x96xf32, #tpu.memory_space<vmem>>, %arg4: memref<1x4x8x8xf32, #tpu.memory_space<vmem>>, %arg5: memref<1x4x8x8xf32, #tpu.memory_space<vmem>>, %arg6: memref<1x4x8x8xf32, #tpu.memory_space<vmem>>) attributes {dimension_semantics = [#tpu.dimension_semantics<parallel>, #tpu.dimension_semantics<parallel>], iteration_bounds = array<i64: 2, 1>, scalar_prefetch = 0 : i64, scratch_operands = 0 : i64, tpu.core_type = #tpu.core_type<tc>, window_params = [{transform_indices = @transform_0, window_bounds = array<i64: 1, 8, 32>}, {pipeline_mode = #tpu.pipeline_mode<synchronous>, transform_indices = @transform_1, window_bounds = array<i64: 32, 96>}, {transform_indices = @transform_2, window_bounds = array<i64: 1, 4, 8, 8>}, {transform_indices = @transform_3, window_bounds = array<i64: 1, 4, 8, 8>}, {transform_indices = @transform_4, window_bounds = array<i64: 1, 4, 8, 8>}]} {
    %c0 = arith.constant 0 : index
    %c0_0 = arith.constant 0 : index
    %c0_1 = arith.constant 0 : index
    %0 = vector.load %arg2[%c0, %c0_0, %c0_1] : memref<1x8x32xf32, #tpu.memory_space<vmem>>, vector<1x8x32xf32>
    %1 = vector.shape_cast %0 : vector<1x8x32xf32> to vector<8x32xf32>
    %c0_2 = arith.constant 0 : index
    %c0_3 = arith.constant 0 : index
    %2 = vector.load %arg3[%c0_2, %c0_3] : memref<32x96xf32, #tpu.memory_space<vmem>>, vector<32x96xf32>
    %cst = arith.constant dense<0.000000e+00> : vector<8x96xf32>
    %3 = tpu.matmul %1, %2, %cst {dimension_numbers = #tpu.dot_dimension_numbers<[1], [0], [0], [1], [0, 0, 1, 1], [], []>} : vector<8x32xf32>, vector<32x96xf32>, vector<8x96xf32> -> vector<8x96xf32>
    %4 = vector.extract_strided_slice %3 {offsets = [0, 0], sizes = [8, 8], strides = [1, 1]} : vector<8x96xf32> to vector<8x8xf32>
    %c0_4 = arith.constant 0 : index
    %c0_5 = arith.constant 0 : index
    %c0_6 = arith.constant 0 : index
    %c0_7 = arith.constant 0 : index
    %5 = vector.load %arg4[%c0_4, %c0_5, %c0_6, %c0_7] : memref<1x4x8x8xf32, #tpu.memory_space<vmem>>, vector<1x1x8x8xf32>
    %6 = vector.shape_cast %5 : vector<1x1x8x8xf32> to vector<8x8xf32>
    %7 = vector.shape_cast %4 : vector<8x8xf32> to vector<1x1x8x8xf32>
    tpu.vector_store %arg4[%c0_4, %c0_5, %c0_6, %c0_7], %7 {strides = array<i32>} : memref<1x4x8x8xf32, #tpu.memory_space<vmem>>, vector<1x1x8x8xf32>,
    %8 = vector.extract_strided_slice %3 {offsets = [0, 32], sizes = [8, 8], strides = [1, 1]} : vector<8x96xf32> to vector<8x8xf32>
    %c0_8 = arith.constant 0 : index
    %c0_9 = arith.constant 0 : index
    %c0_10 = arith.constant 0 : index
    %c0_11 = arith.constant 0 : index
    %9 = vector.load %arg5[%c0_8, %c0_9, %c0_10, %c0_11] : memref<1x4x8x8xf32, #tpu.memory_space<vmem>>, vector<1x1x8x8xf32>
    %10 = vector.shape_cast %9 : vector<1x1x8x8xf32> to vector<8x8xf32>
    %11 = vector.shape_cast %8 : vector<8x8xf32> to vector<1x1x8x8xf32>
    tpu.vector_store %arg5[%c0_8, %c0_9, %c0_10, %c0_11], %11 {strides = array<i32>} : memref<1x4x8x8xf32, #tpu.memory_space<vmem>>, vector<1x1x8x8xf32>,
    %12 = vector.extract_strided_slice %3 {offsets = [0, 64], sizes = [8, 8], strides = [1, 1]} : vector<8x96xf32> to vector<8x8xf32>
    %c0_12 = arith.constant 0 : index
    %c0_13 = arith.constant 0 : index
    %c0_14 = arith.constant 0 : index
    %c0_15 = arith.constant 0 : index
    %13 = vector.load %arg6[%c0_12, %c0_13, %c0_14, %c0_15] : memref<1x4x8x8xf32, #tpu.memory_space<vmem>>, vector<1x1x8x8xf32>
    %14 = vector.shape_cast %13 : vector<1x1x8x8xf32> to vector<8x8xf32>
    %15 = vector.shape_cast %12 : vector<8x8xf32> to vector<1x1x8x8xf32>
    tpu.vector_store %arg6[%c0_12, %c0_13, %c0_14, %c0_15], %15 {strides = array<i32>} : memref<1x4x8x8xf32, #tpu.memory_space<vmem>>, vector<1x1x8x8xf32>,
    %16 = vector.extract_strided_slice %3 {offsets = [0, 8], sizes = [8, 8], strides = [1, 1]} : vector<8x96xf32> to vector<8x8xf32>
    %c0_16 = arith.constant 0 : index
    %c1 = arith.constant 1 : index
    %c0_17 = arith.constant 0 : index
    %c0_18 = arith.constant 0 : index
    %17 = vector.load %arg4[%c0_16, %c1, %c0_17, %c0_18] : memref<1x4x8x8xf32, #tpu.memory_space<vmem>>, vector<1x1x8x8xf32>
    %18 = vector.shape_cast %17 : vector<1x1x8x8xf32> to vector<8x8xf32>
    %19 = vector.shape_cast %16 : vector<8x8xf32> to vector<1x1x8x8xf32>
    tpu.vector_store %arg4[%c0_16, %c1, %c0_17, %c0_18], %19 {strides = array<i32>} : memref<1x4x8x8xf32, #tpu.memory_space<vmem>>, vector<1x1x8x8xf32>,
    %20 = vector.extract_strided_slice %3 {offsets = [0, 40], sizes = [8, 8], strides = [1, 1]} : vector<8x96xf32> to vector<8x8xf32>
    %c0_19 = arith.constant 0 : index
    %c1_20 = arith.constant 1 : index
    %c0_21 = arith.constant 0 : index
    %c0_22 = arith.constant 0 : index
    %21 = vector.load %arg5[%c0_19, %c1_20, %c0_21, %c0_22] : memref<1x4x8x8xf32, #tpu.memory_space<vmem>>, vector<1x1x8x8xf32>
    %22 = vector.shape_cast %21 : vector<1x1x8x8xf32> to vector<8x8xf32>
    %23 = vector.shape_cast %20 : vector<8x8xf32> to vector<1x1x8x8xf32>
    tpu.vector_store %arg5[%c0_19, %c1_20, %c0_21, %c0_22], %23 {strides = array<i32>} : memref<1x4x8x8xf32, #tpu.memory_space<vmem>>, vector<1x1x8x8xf32>,
    %24 = vector.extract_strided_slice %3 {offsets = [0, 72], sizes = [8, 8], strides = [1, 1]} : vector<8x96xf32> to vector<8x8xf32>
    %c0_23 = arith.constant 0 : index
    %c1_24 = arith.constant 1 : index
    %c0_25 = arith.constant 0 : index
    %c0_26 = arith.constant 0 : index
    %25 = vector.load %arg6[%c0_23, %c1_24, %c0_25, %c0_26] : memref<1x4x8x8xf32, #tpu.memory_space<vmem>>, vector<1x1x8x8xf32>
    %26 = vector.shape_cast %25 : vector<1x1x8x8xf32> to vector<8x8xf32>
    %27 = vector.shape_cast %24 : vector<8x8xf32> to vector<1x1x8x8xf32>
    tpu.vector_store %arg6[%c0_23, %c1_24, %c0_25, %c0_26], %27 {strides = array<i32>} : memref<1x4x8x8xf32, #tpu.memory_space<vmem>>, vector<1x1x8x8xf32>,
    %28 = vector.extract_strided_slice %3 {offsets = [0, 16], sizes = [8, 8], strides = [1, 1]} : vector<8x96xf32> to vector<8x8xf32>
    %c0_27 = arith.constant 0 : index
    %c2 = arith.constant 2 : index
    %c0_28 = arith.constant 0 : index
    %c0_29 = arith.constant 0 : index
    %29 = vector.load %arg4[%c0_27, %c2, %c0_28, %c0_29] : memref<1x4x8x8xf32, #tpu.memory_space<vmem>>, vector<1x1x8x8xf32>
    %30 = vector.shape_cast %29 : vector<1x1x8x8xf32> to vector<8x8xf32>
    %31 = vector.shape_cast %28 : vector<8x8xf32> to vector<1x1x8x8xf32>
    tpu.vector_store %arg4[%c0_27, %c2, %c0_28, %c0_29], %31 {strides = array<i32>} : memref<1x4x8x8xf32, #tpu.memory_space<vmem>>, vector<1x1x8x8xf32>,
    %32 = vector.extract_strided_slice %3 {offsets = [0, 48], sizes = [8, 8], strides = [1, 1]} : vector<8x96xf32> to vector<8x8xf32>
    %c0_30 = arith.constant 0 : index
    %c2_31 = arith.constant 2 : index
    %c0_32 = arith.constant 0 : index
    %c0_33 = arith.constant 0 : index
    %33 = vector.load %arg5[%c0_30, %c2_31, %c0_32, %c0_33] : memref<1x4x8x8xf32, #tpu.memory_space<vmem>>, vector<1x1x8x8xf32>
    %34 = vector.shape_cast %33 : vector<1x1x8x8xf32> to vector<8x8xf32>
    %35 = vector.shape_cast %32 : vector<8x8xf32> to vector<1x1x8x8xf32>
    tpu.vector_store %arg5[%c0_30, %c2_31, %c0_32, %c0_33], %35 {strides = array<i32>} : memref<1x4x8x8xf32, #tpu.memory_space<vmem>>, vector<1x1x8x8xf32>,
    %36 = vector.extract_strided_slice %3 {offsets = [0, 80], sizes = [8, 8], strides = [1, 1]} : vector<8x96xf32> to vector<8x8xf32>
    %c0_34 = arith.constant 0 : index
    %c2_35 = arith.constant 2 : index
    %c0_36 = arith.constant 0 : index
    %c0_37 = arith.constant 0 : index
    %37 = vector.load %arg6[%c0_34, %c2_35, %c0_36, %c0_37] : memref<1x4x8x8xf32, #tpu.memory_space<vmem>>, vector<1x1x8x8xf32>
    %38 = vector.shape_cast %37 : vector<1x1x8x8xf32> to vector<8x8xf32>
    %39 = vector.shape_cast %36 : vector<8x8xf32> to vector<1x1x8x8xf32>
    tpu.vector_store %arg6[%c0_34, %c2_35, %c0_36, %c0_37], %39 {strides = array<i32>} : memref<1x4x8x8xf32, #tpu.memory_space<vmem>>, vector<1x1x8x8xf32>,
    %40 = vector.extract_strided_slice %3 {offsets = [0, 24], sizes = [8, 8], strides = [1, 1]} : vector<8x96xf32> to vector<8x8xf32>
    %c0_38 = arith.constant 0 : index
    %c3 = arith.constant 3 : index
    %c0_39 = arith.constant 0 : index
    %c0_40 = arith.constant 0 : index
    %41 = vector.load %arg4[%c0_38, %c3, %c0_39, %c0_40] : memref<1x4x8x8xf32, #tpu.memory_space<vmem>>, vector<1x1x8x8xf32>
    %42 = vector.shape_cast %41 : vector<1x1x8x8xf32> to vector<8x8xf32>
    %43 = vector.shape_cast %40 : vector<8x8xf32> to vector<1x1x8x8xf32>
    tpu.vector_store %arg4[%c0_38, %c3, %c0_39, %c0_40], %43 {strides = array<i32>} : memref<1x4x8x8xf32, #tpu.memory_space<vmem>>, vector<1x1x8x8xf32>,
    %44 = vector.extract_strided_slice %3 {offsets = [0, 56], sizes = [8, 8], strides = [1, 1]} : vector<8x96xf32> to vector<8x8xf32>
    %c0_41 = arith.constant 0 : index
    %c3_42 = arith.constant 3 : index
    %c0_43 = arith.constant 0 : index
    %c0_44 = arith.constant 0 : index
    %45 = vector.load %arg5[%c0_41, %c3_42, %c0_43, %c0_44] : memref<1x4x8x8xf32, #tpu.memory_space<vmem>>, vector<1x1x8x8xf32>
    %46 = vector.shape_cast %45 : vector<1x1x8x8xf32> to vector<8x8xf32>
    %47 = vector.shape_cast %44 : vector<8x8xf32> to vector<1x1x8x8xf32>
    tpu.vector_store %arg5[%c0_41, %c3_42, %c0_43, %c0_44], %47 {strides = array<i32>} : memref<1x4x8x8xf32, #tpu.memory_space<vmem>>, vector<1x1x8x8xf32>,
    %48 = vector.extract_strided_slice %3 {offsets = [0, 88], sizes = [8, 8], strides = [1, 1]} : vector<8x96xf32> to vector<8x8xf32>
    %c0_45 = arith.constant 0 : index
    %c3_46 = arith.constant 3 : index
    %c0_47 = arith.constant 0 : index
    %c0_48 = arith.constant 0 : index
    %49 = vector.load %arg6[%c0_45, %c3_46, %c0_47, %c0_48] : memref<1x4x8x8xf32, #tpu.memory_space<vmem>>, vector<1x1x8x8xf32>
    %50 = vector.shape_cast %49 : vector<1x1x8x8xf32> to vector<8x8xf32>
    %51 = vector.shape_cast %48 : vector<8x8xf32> to vector<1x1x8x8xf32>
    tpu.vector_store %arg6[%c0_45, %c3_46, %c0_47, %c0_48], %51 {strides = array<i32>} : memref<1x4x8x8xf32, #tpu.memory_space<vmem>>, vector<1x1x8x8xf32>,
    return
  }
  func.func @transform_0(%arg0: i32, %arg1: i32) -> (i32, i32, i32) {
    %c0_i32 = arith.constant 0 : i32
    %c0_i32_0 = arith.constant 0 : i32
    return %arg0, %arg1, %c0_i32 : i32, i32, i32
  }
  func.func @transform_1(%arg0: i32, %arg1: i32) -> (i32, i32) {
    %c0_i32 = arith.constant 0 : i32
    %c0_i32_0 = arith.constant 0 : i32
    %c0_i32_1 = arith.constant 0 : i32
    return %c0_i32, %c0_i32_0 : i32, i32
  }
  func.func @transform_2(%arg0: i32, %arg1: i32) -> (i32, i32, i32, i32) {
    %c0_i32 = arith.constant 0 : i32
    %c0_i32_0 = arith.constant 0 : i32
    %c0_i32_1 = arith.constant 0 : i32
    return %arg0, %c0_i32, %arg1, %c0_i32_0 : i32, i32, i32, i32
  }
  func.func @transform_3(%arg0: i32, %arg1: i32) -> (i32, i32, i32, i32) {
    %c0_i32 = arith.constant 0 : i32
    %c0_i32_0 = arith.constant 0 : i32
    %c0_i32_1 = arith.constant 0 : i32
    return %arg0, %c0_i32, %arg1, %c0_i32_0 : i32, i32, i32, i32
  }
  func.func @transform_4(%arg0: i32, %arg1: i32) -> (i32, i32, i32, i32) {
    %c0_i32 = arith.constant 0 : i32
    %c0_i32_0 = arith.constant 0 : i32
    %c0_i32_1 = arith.constant 0 : i32
    return %arg0, %c0_i32, %arg1, %c0_i32_0 : i32, i32, i32, i32
  }
}

</mosaic_0001>

<bundles_post_ra>
// kernel: tpu_custom_call.1
= control target key start
LH: loop header
LB: loop body
LE: loop exit
PB: predicated region body
PF: predicated region fallthrough
CT: control target
= control target key end

     0   :  { %s1302_s0 = inlined_call_operand.hbm [shape: f32[2,8,32], index: 0, kind: input, shape index: {}]   ;;  %s1303_s1 = inlined_call_operand.hbm [shape: f32[32,96], index: 1, kind: input, shape index: {}]   ;;  %s1304_s2 = inlined_call_operand.hbm [shape: f32[2,4,8,8], index: 2, kind: output, shape index: {0}]   ;;  %s1305_s3 = inlined_call_operand.hbm [shape: f32[2,4,8,8], index: 3, kind: output, shape index: {1}]   ;;  %s1306_s4 = inlined_call_operand.hbm [shape: f32[2,4,8,8], index: 4, kind: output, shape index: {2}]  }
   0x1   :  { %1309 = sst [smem:[#allocation15_spill]] %s1303_s1 }
   0x2   :  { %10 = vsyncpa [#allocation3], 0 }
   0x3   :  { %12 = vsyncpa [#allocation3 + $0x1], 0 }
   0x4   :  { %13 = vsyncpa [#allocation6], 0 }
   0x5   :  { %14 = vsyncpa [#allocation4], 0 }
   0x6   :  { %16 = vsyncpa [#allocation4 + $0x1], 0 }
   0x7   :  { %17 = vsyncpa [#allocation9], 0 }
   0x8   :  { %19 = vsyncpa [#allocation9 + $0x1], 0  ;;  %s1016_s15 = smov 0   ;;  %s1018_s16 = smov 0  }
   0x9   :  { %s1020_s17 = smov 0   ;;  %s1022_s18 = smov 0  }
   0xa   :  { %s1024_s19 = smov 0   ;;  %s1026_s20 = smov 0  }
   0xb LB: > { %s1047_s21 = sadd.s32 4294967295, %s967_s20   ;;  %s1307_s22 = sadd.s32 4294967294, %s967_s20   ;;  %s967_s20 = sphi %s1026_s20, %s25_s20   ;;  %s963_s19 = sphi %s1024_s19, %s1328_s19   ;;  %s959_s18 = sphi %s1022_s18, %s1327_s18   ;;  %s955_s17 = sphi %s1020_s17, %s1326_s17   ;;  %s951_s16 = sphi %s1018_s16, %s1325_s16   ;;  %s947_s15 = sphi %s1016_s15, %s1324_s15  }
   0xc   : > { %p59_p0 = scmp.ne.s32.totalorder %s951_s16, %s947_s15  ;;  %p1308_p1 = scmp.eq.s32.totalorder %s1047_s21, 0 }
   0xd   : > { %p112_p3 = scmp.eq.s32.totalorder %s1307_s22, 1  ;;  %p622_p5 = scmp.ge.s32.totalorder %s967_s20, 1 }
   0xe   : > { %p1058_p4 = por %p1308_p1, %p59_p0  ;;  %p175_p7 = scmp.lt.s32.totalorder %s967_s20, 3 }
   0xf   : > { %p1063_p6 = por %p112_p3, %p59_p0  ;;  %s969_s26 = smov [#allocation5]  }
  0x10   : > { %p1068_p8 = pnand %p622_p5, %p175_p7  ;;  %s187_s27 = sshll.u32 %s969_s26, 4  ;;  %s188_s27 = int_to_ptr.vmem [resolvable:$true] %s187_s27 }
  0x11   : > { %s1311_s24 = scalar_select %p1063_p6, 1, 0 }
  0x12   : > { %p685_p9 = pneg %p1068_p8  ;;  %s37_s29 = sadd.s32 1, %s963_s19 }
  0x13   : > { %s784_s30 = scalar_lea.vmem %s188_s27, 512  ;;  %p792_p5 = scmp.lt.s32.totalorder %s188_s27, %s188_s27 }
  0x14   : > { %p1077_p11 = pnand %p685_p9, %p1308_p1  ;;  %p785_p13 = scmp.ne.s32.totalorder %s188_s27, %s784_s30 }
  0x15   : > { %p793_p7 = scmp.lt.s32.totalorder %s784_s30, %s784_s30 }
  0x16   : > { %p775_p12 = pneg %p1077_p11 }
  0x17   : > { %p794_p2 = por %p793_p7, %p792_p5 }
  0x18   : > { %p787_p0 = pnand %p785_p13, %p775_p12 }
  0x1a   : > { %p788_p3 = pneg %p787_p0 }
  0x1c   : > { %p795_p6 = pnand %p794_p2, %p788_p3 }
  0x1e   : > { %798 = shalt.err (!%p795_p6)
}
  0x1f   : > { %s970_s5 = smov 128   ;;  %s971_s6 = smov 8  }
  0x20   : > { %s1314_s1 = sld [smem:[#allocation15_spill]]  ;;  %p39_p2 = scmp.ge.s32.totalorder %s37_s29, 2 }
  0x21   : > { %s46_s9 = sadd.s32 1, %s955_s17  ;;  %p53_p6 = scmp.ne.s32.totalorder %s955_s17, %s951_s16 }
  0x22   : > { %p54_p9 = scmp.eq.s32.totalorder %s967_s20, 0  ;;  %s1330_s29 = smov (%p39_p2, %s37_s29), 0 }
  0x23   : > { %p1316_p13 = scmp.eq.s32.totalorder %s1047_s21, 1  ;;  %s41_s12 = ssub.s32 %s963_s19, %s1330_s29 }
  0x24   : > { %p1095_p12 = por %p54_p9, %p53_p6  ;;  %p704_p3 = scmp.lt.s32.totalorder %s967_s20, 2 }
  0x25   : > { %p1101_p0 = por %p1316_p13, %p53_p6  ;;  %s201_s13 = sand.u32 1, %s955_s17  }
  0x26   : > { %688 = dma.hbm_to_vmem [thread:$0]  (!%p1077_p11), %s1314_s1, 512, %s188_s27, [#allocation6], %s970_s5, %s970_s5, %s971_s6  }
  0x27   : > { %p44_p11 = scmp.eq.s32.totalorder %s41_s12, 0  ;;  %s625_s14 = sshll.u32 %s201_s13, 3 }
  0x28   : > { %s626_s27 = sshll.u32 %s963_s19, 7  ;;  %s205_s6 = scalar_lea.vmem [#allocation2], %s625_s14 }
  0x29   : > { %s1110_s26 = scalar_select %p44_p11, %s955_s17, %s46_s9  }
  0x2a   : > { %s211_s5 = scalar_lea.hbm %s1302_s0, %s626_s27  ;;  %s213_s7 = sshll.u32 %s205_s6, 4  ;;  %s214_s7 = int_to_ptr.vmem [resolvable:$true] %s213_s7 }
  0x2b   : > { %p1118_p5 = pnand %p704_p3, %p1095_p12  ;;  %s202_s22 = scalar_lea.sflag [#allocation3], %s201_s13 }
  0x2c   : > { %s812_s12 = scalar_lea.vmem %s214_s7, 128  ;;  %s972_s9 = smov [#allocation2]  }
  0x2d   : > { %p801_p7 = pneg %p1118_p5  ;;  %p813_p2 = scmp.ne.s32.totalorder %s214_s7, %s812_s12 }
  0x2e   : > { %s817_s1 = sshll.u32 %s972_s9, 4  ;;  %s818_s1 = int_to_ptr.vmem [resolvable:$false] %s817_s1 }
  0x2f   : > { %p815_p6 = pnand %p813_p2, %p801_p7  ;;  %s819_s27 = scalar_lea.vmem %s818_s1, 256 }
  0x30   : > { %p820_p13 = scmp.lt.s32.totalorder %s214_s7, %s818_s1  ;;  %p821_p11 = scmp.lt.s32.totalorder %s819_s27, %s812_s12 }
  0x31   : > { %p816_p9 = pneg %p815_p6 }
  0x32   : > { %p822_p10 = por %p821_p11, %p820_p13 }
  0x34   : > { %p823_p1 = pnand %p822_p10, %p816_p9 }
  0x36   : > { %826 = shalt.err (!%p823_p1)
}
  0x37   : > { %692 = dma.hbm_to_vmem [thread:$0]  (!%p1118_p5), %s211_s5, 128, %s214_s7, %s202_s22  }
  0x38   : > { %222 = sbr.rel (%p1068_p8) target bundleno = 446 (0x1be), region = 28  ;;  %s1129_s10 = sand.u32 (!%p1068_p8), 1, %s951_s16  }
  0x39   : > { %s628_s13 = sshll.u32 (!%p1068_p8), %s1129_s10, 3  ;;  %s225_s14 = scalar_lea.sflag (!%p1068_p8), [#allocation3], %s1129_s10 }
  0x3a   : > { %s228_s28 = scalar_lea.vmem (!%p1068_p8), [#allocation2], %s628_s13 }
  0x3d   : > { %930 = dma.done.wait (%p1058_p4), %s225_s14, 128  }
  0x3e   : > { %932 = vsyncadd (%p1058_p4), %s225_s14, 4294967168  ;;  %p1319_p1 = scmp.eq.s32.totalorder %s1047_s21, 0 }
  0x40   : > { %934 = dma.done.wait (%p1319_p1), [#allocation6], 512   ;;  %p1320_p10 = pmov %p1319_p1 }
  0x41   : > { %v973_v0 = vmov 0.0   ;;  %vm974_vm0 = vmmov 0   ;;  %v271_v1 = vld [vmem:[#allocation5 + $0x18] sm:$0xff]  ;;  %v270_v2 = vld [vmem:[#allocation5 + $0x10] sm:$0xff]  ;;  %v269_v3 = vld [vmem:[#allocation5 + $0x8] sm:$0xff]  ;;  %vm272_vm1 = vcmask 261120  }
  0x42   : > { %936 = vsyncadd (%p1320_p10), [#allocation6], 4294966784  ;;  %662 = vmatprep.subr.mxu0 %v973_v0  ;;  %670 = vmatprep.mubr.msk.f32.mxu0 %vm974_vm0, %v973_v0  ;;  %v268_v4 = vld [vmem:[#allocation5] sm:$0xff]  ;;  %v267_v5 = vld [vmem:[%s228_s28] sm:$0xff]  ;;  %s1142_s1 = sshll.u32 %s1129_s10, 5  ;;  %vm346_vm2 = vcmask 64512  }
  0x43   : > { %663 = vmatpush3.msra.mxu0 %v271_v1  ;;  %s975_s22 = smov 80   ;;  %s976_s23 = smov 96  }
  0x44   : > { %664 = vmatprep.subr.mxu0 %v973_v0  ;;  %s1145_s25 = scalar_lea.vmem [#allocation7], %s1142_s1  ;;  %s977_s30 = smov 72  }
  0x45   : > { %665 = vmatpush3.msra.mxu0 %v270_v2  ;;  %s978_s5 = smov 88   ;;  %s979_s6 = smov 120  }
  0x46   : > { %666 = vmatprep.subr.mxu0 %v973_v0  ;;  %s980_s7 = smov 64   ;;  %s981_s8 = smov 112  }
  0x47   : > { %667 = vmatpush3.msra.mxu0 %v269_v3  ;;  %s982_s12 = smov 56   ;;  %s983_s9 = smov 104  }
  0x48   : > { %668 = vmatprep.subr.mxu0 %v973_v0  ;;  %s984_s27 = smov 48   ;;  %s985_s13 = smov 40  }
  0x49   : > { %669 = vmatpush3.msra.mxu0 %v268_v4  ;;  %s259_s14 = scalar_lea.vmem [#allocation8], %s1142_s1 }
  0x4a   : > { %671 = vmatmul.mubr.msk.f32.vlgmr.msra.gmra.mxu0 %vm272_vm1, %v267_v5  ;;  %s444_s28 = sshll.u32 %s259_s14, 4  ;;  %s1154_s28 = int_to_ptr.vmem [resolvable:$true] %s444_s28 }
 0x10a   : > { %v342_v6 = vpop.f32.mrf.mxu0 }
 0x10b   : > { %377 = vrot.lane.b32.xlu1 %v342_v6, %s975_s22  ;;  %349 = vrot.lane.b32.xlu0 %v342_v6, %s976_s23  ;;  %347 = vst.msk [vmem:[%s1145_s25] sm:$0xff] %vm346_vm2, %v342_v6  ;;  %s407_s22 = sand.u32 1, %s1047_s21   ;;  %s1152_s23 = sshll.u32 %s959_s18, 9 }
 0x10c   : > { %v672_v7 = vpop.f32.mrf.mxu0  ;;  %s1166_s18 = scalar_lea.sflag [#allocation9], %s407_s22  ;;  %s827_s21 = scalar_lea.vmem %s1154_s28, 512 }
 0x10d   : > { %p828_p4 = scmp.ne.s32.totalorder %s1154_s28, %s827_s21 }
 0x10f   : > { %392 = vrot.lane.b32.xlu1 %v342_v6, %s977_s30  ;;  %362 = vrot.lane.b32.xlu0 %v342_v6, %s978_s5  ;;  %p829_p8 = pnand %p828_p4, %p1101_p0 }
 0x111   : > { %p830_p12 = pneg %p829_p8 }
 0x113   : > { %357 = vrot.lane.b32.xlu1 %v342_v6, %s979_s6  ;;  %353 = vrot.lane.b32.xlu0 %v342_v6, %s980_s7  ;;  %s1162_s6 = scalar_lea.hbm %s1305_s3, %s1152_s23  ;;  %s986_s7 = smov [#allocation8]  }
 0x117   : > { %372 = vrot.lane.b32.xlu1 %v342_v6, %s981_s8  ;;  %367 = vrot.lane.b32.xlu0 %v342_v6, %s982_s12  ;;  %s831_s8 = sshll.u32 %s986_s7, 4  ;;  %s832_s8 = int_to_ptr.vmem [resolvable:$false] %s831_s8 }
 0x118   : > { %s833_s12 = scalar_lea.vmem %s832_s8, 1024  ;;  %p834_p3 = scmp.lt.s32.totalorder %s1154_s28, %s832_s8 }
 0x119   : > { %p835_p5 = scmp.lt.s32.totalorder %s833_s12, %s827_s21 }
 0x11b   : > { %387 = vrot.lane.b32.xlu1 %v342_v6, %s983_s9  ;;  %382 = vrot.lane.b32.xlu0 %v342_v6, %s984_s27  ;;  %p836_p7 = por %p835_p5, %p834_p3 }
 0x11d   : > { %p837_p2 = pnand %p836_p7, %p830_p12 }
 0x11f   : > { %397 = vrot.lane.b32.xlu0 %v342_v6, %s985_s13 }
 0x17d   : > { %v378_v8 = vpop.permute.xlu1 %377  ;;  %v350_v9 = vpop.permute.xlu0 %349 }
 0x17e   : > { %638 = vst.msk [vmem:[%s259_s14 + $0x10] sm:$0xff] %vm346_vm2, %v378_v8  ;;  %352 = vst.msk [vmem:[%s259_s14] sm:$0xff] %vm346_vm2, %v350_v9 }
 0x181   : > { %v393_v10 = vpop.permute.xlu1 %392  ;;  %v363_v11 = vpop.permute.xlu0 %362 }
 0x182   : > { %641 = vst.msk [vmem:[%s259_s14 + $0x18] sm:$0xff] %vm346_vm2, %v393_v10  ;;  %635 = vst.msk [vmem:[%s259_s14 + $0x8] sm:$0xff] %vm346_vm2, %v363_v11 }
 0x183   : > { %840 = shalt.err (!%p837_p2)
}
 0x184   : > { %s841_s9 = scalar_lea.hbm %s1162_s6, 512  ;;  %s845_s14 = scalar_lea.hbm %s1305_s3, 1024 }
 0x185   : > { %p842_p6 = scmp.ne.s32.totalorder %s1162_s6, %s841_s9  ;;  %p846_p11 = scmp.lt.s32.totalorder %s1162_s6, %s1305_s3 }
 0x186   : > { %p847_p1 = scmp.lt.s32.totalorder %s845_s14, %s841_s9 }
 0x187   : > { %p843_p9 = pnand %p842_p6, %p1101_p0 }
 0x188   : > { %p848_p10 = por %p847_p1, %p846_p11 }
 0x189   : > { %p844_p13 = pneg %p843_p9 }
 0x18b   : > { %p849_p4 = pnand %p848_p10, %p844_p13 }
 0x18d   : > { %852 = shalt.err (!%p849_p4)
}
 0x18e   : > { %s987_s5 = smov 128   ;;  %s988_s21 = smov 8   ;;  %v358_v12 = vpop.permute.xlu1 %357  ;;  %v354_v13 = vpop.permute.xlu0 %353 }
 0x18f   : > { %680 = dma.vmem_to_hbm [thread:$0]  (%p1101_p0), %s1154_s28, 512, %s1162_s6, %s1166_s18, %s987_s5, %s987_s5, %s988_s21  }
 0x190   : > { %634 = vst.msk [vmem:[%s1145_s25 + $0x8] sm:$0xff] %vm346_vm2, %v358_v12  ;;  %s1195_s7 = scalar_lea.vmem [#allocation10], %s1142_s1  ;;  %s427_s8 = sshll.u32 %s1145_s25, 4  ;;  %s1204_s8 = int_to_ptr.vmem [resolvable:$true] %s427_s8 }
 0x191   : > { %356 = vst.msk [vmem:[%s1195_s7] sm:$0xff] %vm346_vm2, %v354_v13  ;;  %s1210_s1 = scalar_lea.hbm %s1304_s2, %s1152_s23  ;;  %s461_s12 = sshll.u32 %s1195_s7, 4  ;;  %s1243_s12 = int_to_ptr.vmem [resolvable:$true] %s461_s12 }
 0x192   : > { %v373_v14 = vpop.permute.xlu1 %372  ;;  %v368_v15 = vpop.permute.xlu0 %367  ;;  %s403_s9 = scalar_lea.sflag [#allocation4], %s1129_s10  ;;  %s853_s27 = scalar_lea.vmem %s1204_s8, 512 }
 0x193   : > { %637 = vst.msk [vmem:[%s1145_s25 + $0x10] sm:$0xff] %vm346_vm2, %v373_v14  ;;  %636 = vst.msk [vmem:[%s1195_s7 + $0x8] sm:$0xff] %vm346_vm2, %v368_v15  ;;  %p854_p8 = scmp.ne.s32.totalorder %s1204_s8, %s853_s27  ;;  %s989_s13 = smov [#allocation7]  }
 0x194   : > { %s857_s14 = sshll.u32 %s989_s13, 4  ;;  %s858_s14 = int_to_ptr.vmem [resolvable:$false] %s857_s14 }
 0x195   : > { %p855_p12 = pnand %p854_p8, %p1101_p0  ;;  %s859_s22 = scalar_lea.vmem %s858_s14, 1024 }
 0x196   : > { %v388_v16 = vpop.permute.xlu1 %387  ;;  %v383_v17 = vpop.permute.xlu0 %382  ;;  %p860_p5 = scmp.lt.s32.totalorder %s1204_s8, %s858_s14  ;;  %p861_p7 = scmp.lt.s32.totalorder %s859_s22, %s853_s27 }
 0x197   : > { %640 = vst.msk [vmem:[%s1145_s25 + $0x18] sm:$0xff] %vm346_vm2, %v388_v16  ;;  %639 = vst.msk [vmem:[%s1195_s7 + $0x10] sm:$0xff] %vm346_vm2, %v383_v17  ;;  %p856_p3 = pneg %p855_p12 }
 0x198   : > { %p862_p2 = por %p861_p7, %p860_p5 }
 0x19a   : > { %p863_p6 = pnand %p862_p2, %p856_p3 }
 0x19c   : > { %866 = shalt.err (!%p863_p6)
}
 0x19d   : > { %s867_s25 = scalar_lea.hbm %s1210_s1, 512  ;;  %s871_s28 = scalar_lea.hbm %s1304_s2, 1024 }
 0x19e   : > { %p868_p9 = scmp.ne.s32.totalorder %s1210_s1, %s867_s25  ;;  %p872_p1 = scmp.lt.s32.totalorder %s1210_s1, %s1304_s2 }
 0x19f   : > { %p873_p10 = scmp.lt.s32.totalorder %s871_s28, %s867_s25 }
 0x1a0   : > { %p869_p13 = pnand %p868_p9, %p1101_p0 }
 0x1a1   : > { %p874_p4 = por %p873_p10, %p872_p1 }
 0x1a2   : > { %p870_p11 = pneg %p869_p13 }
 0x1a4   : > { %p875_p8 = pnand %p874_p4, %p870_p11 }
 0x1a6   : > { %878 = shalt.err (!%p875_p8)
}
 0x1a7   : > { %679 = dma.vmem_to_hbm [thread:$0]  (%p1101_p0), %s1204_s8, 512, %s1210_s1, %s403_s9, %s987_s5, %s987_s5, %s988_s21   ;;  %v398_v18 = vpop.permute.xlu0 %397 }
 0x1a8   : > { %s1249_s22 = scalar_lea.hbm %s1306_s4, %s1152_s23  ;;  %642 = vst.msk [vmem:[%s1195_s7 + $0x18] sm:$0xff] %vm346_vm2, %v398_v18  ;;  %s879_s25 = scalar_lea.vmem %s1243_s12, 512 }
 0x1a9   : > { %p880_p12 = scmp.ne.s32.totalorder %s1243_s12, %s879_s25  ;;  %s990_s8 = smov [#allocation10]  }
 0x1aa   : > { %s883_s1 = sshll.u32 %s990_s8, 4  ;;  %s884_s1 = int_to_ptr.vmem [resolvable:$false] %s883_s1 }
 0x1ab   : > { %p881_p3 = pnand %p880_p12, %p1101_p0  ;;  %s885_s9 = scalar_lea.vmem %s884_s1, 1024 }
 0x1ac   : > { %p886_p7 = scmp.lt.s32.totalorder %s1243_s12, %s884_s1  ;;  %p887_p2 = scmp.lt.s32.totalorder %s885_s9, %s879_s25 }
 0x1ad   : > { %p882_p5 = pneg %p881_p3 }
 0x1ae   : > { %p888_p6 = por %p887_p2, %p886_p7 }
 0x1b0   : > { %p889_p9 = pnand %p888_p6, %p882_p5 }
 0x1b2   : > { %892 = shalt.err (!%p889_p9)
}
 0x1b3   : > { %s893_s23 = scalar_lea.hbm %s1249_s22, 512  ;;  %s897_s30 = scalar_lea.hbm %s1306_s4, 1024 }
 0x1b4   : > { %p894_p13 = scmp.ne.s32.totalorder %s1249_s22, %s893_s23  ;;  %p898_p10 = scmp.lt.s32.totalorder %s1249_s22, %s1306_s4 }
 0x1b5   : > { %p899_p4 = scmp.lt.s32.totalorder %s897_s30, %s893_s23 }
 0x1b6   : > { %p895_p11 = pnand %p894_p13, %p1101_p0 }
 0x1b7   : > { %p900_p8 = por %p899_p4, %p898_p10 }
 0x1b8   : > { %p896_p1 = pneg %p895_p11 }
 0x1ba   : > { %p901_p12 = pnand %p900_p8, %p896_p1 }
 0x1bc   : > { %904 = shalt.err (!%p901_p12)
}
 0x1bd   : > { %681 = dma.vmem_to_hbm [thread:$0]  (%p1101_p0), %s1243_s12, 512, %s1249_s22, %s1166_s18, %s987_s5, %s987_s5, %s988_s21  }
 0x1be PF: > { %s476_s13 = sand.u32 1, %s947_s15   ;;  %p1321_p3 = scmp.ne.s32.totalorder %s1311_s24, 0 }
 0x1bf   : > { %p1322_p5 = scmp.ge.s32.totalorder %s967_s20, 2  ;;  %s477_s27 = scalar_lea.sflag [#allocation4], %s476_s13 }
 0x1c1   : > { %p694_p7 = pnand %p1322_p5, %p1321_p3 }
 0x1c3   : > { %p695_p2 = pneg %p694_p7 }
 0x1c5   : > { %938 = dma.done.wait (%p695_p2), %s477_s27, 512  }
 0x1c6   : > { %940 = vsyncadd (%p695_p2), %s477_s27, 4294966784  ;;  %s1323_s11 = sadd.s32 4294967294, %s967_s20  }
 0x1c7   : > { %s485_s14 = sand.u32 1, %s1323_s11  }
 0x1c8   : > { %s486_s25 = scalar_lea.sflag [#allocation9], %s485_s14 }
 0x1c9   : > { %942 = dma.done.wait (%p695_p2), %s486_s25, 1024  }
 0x1ca   : > { %944 = vsyncadd (%p695_p2), %s486_s25, 4294966272  ;;  %s25_s20 = sadd.s32 1, %s967_s20   ;;  %s1324_s15 = smov %s951_s16 }
 0x1cb   : > { %p22_p0 = scmp.ge.s32.totalorder %s25_s20, 4   ;;  %s1325_s16 = smov %s955_s17 }
 0x1cc   : > { %s1326_s17 = smov %s1110_s26  ;;  %s1327_s18 = smov %s963_s19 }
 0x1cd   : > { %s1328_s19 = smov %s1330_s29  ;;  %24 = sbr.rel (!%p22_p0) target bundleno = 11 (0xb), region = 118 }
 0x1d2   :  { %500 = vsyncpa [#allocation3], 1 }
 0x1d3   :  { %502 = vsyncpa [#allocation3 + $0x1], 1 }
 0x1d4   :  { %503 = vsyncpa [#allocation6], 1 }
 0x1d5   :  { %504 = vsyncpa [#allocation4], 1 }
 0x1d6   :  { %506 = vsyncpa [#allocation4 + $0x1], 1 }
 0x1d7   :  { %507 = vsyncpa [#allocation9], 1 }
 0x1d8   :  { %509 = vsyncpa [#allocation9 + $0x1], 1 }

</bundles_post_ra>
